<compile_context>
chip_gen: v5e
topology: v5e:2x2
jax: 0.10.0
libtpu: 0.0.40
codegen_flags: <defaults>
</compile_context>

<pallas_src>
import math

import jax
import jax.numpy as jnp
from jax.experimental import pallas as pl
from jax.experimental.pallas import tpu as pltpu


def _round_up(x: int, m: int) -> int:
    return ((x + m - 1) // m) * m


# ---------------------------------------------------------------------------
# Fast path: VMEM-resident table, in-VMEM row gather.
# ---------------------------------------------------------------------------
def _make_vmem_gather_kernel(tokens_per_step: int):
    T = tokens_per_step

    def kernel(ids_ref, table_ref, out_ref):
        # ids_ref:   SMEM scalar-prefetch ref, flat token ids (N_pad,)
        # table_ref: (V, D) whole table, resident in VMEM (constant index_map)
        # out_ref:   (T, D) VMEM output tile for this grid step
        base = pl.program_id(0) * T
        # Static unroll: store offsets are static, only the table-row load
        # uses a dynamic (scalar-prefetched) sublane index.
        for t in range(T):
            row = ids_ref[base + t]
            out_ref[pl.ds(t, 1), :] = table_ref[pl.ds(row, 1), :]

    return kernel


# ---------------------------------------------------------------------------
# HBM-gather path: per-row DMA straight into the output block.
# ---------------------------------------------------------------------------
def _make_hbm_gather_kernel(tokens_per_step: int, max_outstanding: int,
                            unroll: int):
    T = tokens_per_step
    K = max_outstanding  # power of two, <= T

    def kernel(nvalid_ref, ids_ref, table_hbm, out_ref, sem):
        # nvalid_ref: SMEM (1,) true token count (skip DMAs for padded rows)
        # ids_ref:    SMEM flat token ids (N_pad,)
        # table_hbm:  raw HBM ref of the embedding table (V, D)
        # out_ref:    (T, D) VMEM output tile -- DMA destination (no scratch)
        # sem:        (K,) DMA semaphores, round-robin, K copies in flight
        base = pl.program_id(0) * T
        n_valid = nvalid_ref[0]

        def start(row, t):
            @pl.when(base + t < n_valid)          # skip padded tokens
            def _():
                pltpu.make_async_copy(
                    table_hbm.at[pl.ds(row, 1)],  # (1, D) row in HBM
                    out_ref.at[pl.ds(t, 1)],      # (1, D) row of output tile
                    sem.at[t % K],
                ).start()

        def wait(t):
            @pl.when(base + t < n_valid)
            def _():
                # wait() only needs the semaphore + byte count; the source
                # row index is irrelevant.
                pltpu.make_async_copy(
                    table_hbm.at[pl.ds(0, 1)],
                    out_ref.at[pl.ds(t, 1)],
                    sem.at[t % K],
                ).wait()

        # Prime K outstanding row DMAs (statically unrolled).
        for t in range(K):
            start(ids_ref[base + t], t)

        # Steady state: read the next id BEFORE the wait, then reuse the slot.
        if T > K:
            def steady(t, carry):
                nxt = ids_ref[base + t + K]       # hoisted above the wait
                wait(t)
                start(nxt, t + K)
                return carry

            jax.lax.fori_loop(0, T - K, steady, 0, unroll=unroll)

        # Drain the tail (statically unrolled).
        for t in range(T - K, T):
            wait(t)

    return kernel


# ---------------------------------------------------------------------------
# Wrapper.
# ---------------------------------------------------------------------------
def embedder_forward(
    token_ids,
    emb_table,
    *,
    tokens_per_step: int = 256,
    max_outstanding: int = 32,
    vmem_table_bytes: int = 8 * 1024 * 1024,
    out_tile_bytes: int = 4 * 1024 * 1024,
    unroll: int = 8,
):
    """Pallas equivalent of `nn.Embedding(vocab, d_model)(token_ids)`."""
    lead_shape = tuple(token_ids.shape)
    N = int(math.prod(lead_shape))
    V, D = emb_table.shape
    dtype = emb_table.dtype
    itemsize = jnp.dtype(dtype).itemsize

    # PyTorch raises on out-of-range ids; Pallas would silently read garbage.
    flat_ids = jnp.clip(token_ids.reshape(N).astype(jnp.int32), 0, V - 1)

    # Sublane packing of output rows: 8 rows/vreg for 4B, 16 for 2B, 32 for 1B.
    sublane = max(8, 32 // itemsize)
    n_rounded = _round_up(N, sublane)

    # Tokens per grid step from a VMEM byte budget (output tile is
    # double-buffered by the pipeline).
    t_budget = max(sublane,
                   (out_tile_bytes // max(1, D * itemsize)) // sublane * sublane)
    T = min(_round_up(tokens_per_step, sublane), t_budget, n_rounded)
    # Give v7x's two TensorCores >= 2 grid steps whenever there is enough work.
    T = min(T, max(sublane, _round_up((n_rounded + 1) // 2, sublane)))
    T = max(T, sublane)

    # Pad the token count to a multiple of T (padded rows are skipped on the
    # DMA path / trivially cheap on the VMEM path, and sliced off afterwards).
    N_pad = _round_up(N, T)
    if N_pad != N:
        flat_ids = jnp.pad(flat_ids, (0, N_pad - N))

    grid = (N_pad // T,)
    compiler_params = pltpu.CompilerParams(
        dimension_semantics=("parallel",),          # shard tokens across TCs
        vmem_limit_bytes=32 * 1024 * 1024,
    )
    out_shape = jax.ShapeDtypeStruct((N_pad, D), dtype)

    table_bytes = V * D * itemsize
    if table_bytes <= vmem_table_bytes:
        # ---------------- VMEM-resident table fast path ----------------
        out = pl.pallas_call(
            _make_vmem_gather_kernel(T),
            out_shape=out_shape,
            grid_spec=pltpu.PrefetchScalarGridSpec(
                num_scalar_prefetch=1,              # flat ids -> SMEM
                grid=grid,
                in_specs=[
                    # Whole table, constant block index -> fetched once,
                    # resident in VMEM for every grid step.
                    pl.BlockSpec((V, D), lambda i, ids: (0, 0)),
                ],
                out_specs=pl.BlockSpec((T, D), lambda i, ids: (i, 0)),
            ),
            compiler_params=compiler_params,
        )(flat_ids, emb_table)
    else:
        # ---------------- HBM row-gather path (big vocab) ---------------
        K = max(1, min(max_outstanding, T))
        K = 1 << (K.bit_length() - 1)               # power-of-two slot count
        n_valid = jnp.array([N], dtype=jnp.int32)
        out = pl.pallas_call(
            _make_hbm_gather_kernel(T, K, unroll),
            out_shape=out_shape,
            grid_spec=pltpu.PrefetchScalarGridSpec(
                num_scalar_prefetch=2,              # n_valid, flat ids -> SMEM
                grid=grid,
                in_specs=[
                    pl.BlockSpec(memory_space=pl.ANY),   # table stays in HBM
                ],
                out_specs=pl.BlockSpec((T, D), lambda i, n, ids: (i, 0)),
                scratch_shapes=[
                    pltpu.SemaphoreType.DMA((K,)),  # K outstanding row DMAs
                ],
            ),
            compiler_params=compiler_params,
        )(n_valid, flat_ids, emb_table)

    return out[:N].reshape(*lead_shape, D)


if __name__ == "__main__":
    key = jax.random.PRNGKey(0)
    k_emb, k_ids, k_ids2 = jax.random.split(key, 3)

    # Shapes consistent with the module spec (d_model = 256).
    vocab_size = 1000
    d_model = 256
    batch, seq = 2, 8

    # nn.Embedding default init: weights ~ N(0, 1), float32.
    emb_table = jax.random.normal(k_emb, (vocab_size, d_model), dtype=jnp.float32)
    token_ids = jax.random.randint(k_ids, (batch, seq), 0, vocab_size,
                                   dtype=jnp.int32)

    # Fast path: 1000 x 256 f32 = 1 MiB table -> VMEM resident, multi-step grid.
    out = jax.block_until_ready(embedder_forward(token_ids, emb_table))
    ref = jnp.take(emb_table, token_ids.reshape(-1), axis=0).reshape(
        batch, seq, d_model)
    assert out.shape == (batch, seq, d_model)
    assert out.dtype == emb_table.dtype
    assert bool(jnp.allclose(out, ref)), "fast (VMEM-resident) path mismatch"

    # HBM-gather path forced (vmem_table_bytes=0): exercises the direct-into-
    # out_ref DMA pipeline, 32 outstanding copies, multi-step grid, token
    # padding and the padded-token DMA skip (N = 300).
    b2, s2 = 3, 100
    ids2 = jax.random.randint(k_ids2, (b2, s2), 0, vocab_size, dtype=jnp.int32)
    out2 = jax.block_until_ready(
        embedder_forward(ids2, emb_table, vmem_table_bytes=0))
    ref2 = jnp.take(emb_table, ids2.reshape(-1), axis=0).reshape(b2, s2, d_model)
    assert bool(jnp.allclose(out2, ref2)), "HBM row-gather path mismatch"

    print("KERNEL_OK")
</pallas_src>

<mosaic_0001>
module attributes {stable_mosaic.version = 11 : i64} {
  func.func @kernel(%arg0: i32, %arg1: memref<16xi32, #tpu.memory_space<smem>>, %arg2: memref<1000x256xf32, #tpu.memory_space<vmem>>, %arg3: memref<8x256xf32, #tpu.memory_space<vmem>>) attributes {dimension_semantics = [#tpu.dimension_semantics<parallel>], iteration_bounds = array<i64: 2>, scalar_prefetch = 1 : i64, scratch_operands = 0 : i64, tpu.core_type = #tpu.core_type<tc>, window_params = [{pipeline_mode = #tpu.pipeline_mode<synchronous>, transform_indices = @transform_0, window_bounds = array<i64: 1000, 256>}, {transform_indices = @transform_1, window_bounds = array<i64: 8, 256>}]} {
    %c8_i32 = arith.constant 8 : i32
    %0 = arith.muli %arg0, %c8_i32 : i32
    %c0_i32 = arith.constant 0 : i32
    %1 = arith.addi %0, %c0_i32 : i32
    %2 = arith.index_cast %1 : i32 to index
    %3 = memref.load %arg1[%2] : memref<16xi32, #tpu.memory_space<smem>>
    %4 = arith.index_cast %3 : i32 to index
    %c0 = arith.constant 0 : index
    %5 = vector.load %arg2[%4, %c0] : memref<1000x256xf32, #tpu.memory_space<vmem>>, vector<1x256xf32>
    %c0_0 = arith.constant 0 : index
    %c0_1 = arith.constant 0 : index
    %6 = vector.load %arg3[%c0_0, %c0_1] : memref<8x256xf32, #tpu.memory_space<vmem>>, vector<1x256xf32>
    tpu.vector_store %arg3[%c0_0, %c0_1], %5 {strides = array<i32>} : memref<8x256xf32, #tpu.memory_space<vmem>>, vector<1x256xf32>,
    %c1_i32 = arith.constant 1 : i32
    %7 = arith.addi %0, %c1_i32 : i32
    %8 = arith.index_cast %7 : i32 to index
    %9 = memref.load %arg1[%8] : memref<16xi32, #tpu.memory_space<smem>>
    %10 = arith.index_cast %9 : i32 to index
    %c0_2 = arith.constant 0 : index
    %11 = vector.load %arg2[%10, %c0_2] : memref<1000x256xf32, #tpu.memory_space<vmem>>, vector<1x256xf32>
    %c1 = arith.constant 1 : index
    %c0_3 = arith.constant 0 : index
    %12 = vector.load %arg3[%c1, %c0_3] : memref<8x256xf32, #tpu.memory_space<vmem>>, vector<1x256xf32>
    tpu.vector_store %arg3[%c1, %c0_3], %11 {strides = array<i32>} : memref<8x256xf32, #tpu.memory_space<vmem>>, vector<1x256xf32>,
    %c2_i32 = arith.constant 2 : i32
    %13 = arith.addi %0, %c2_i32 : i32
    %14 = arith.index_cast %13 : i32 to index
    %15 = memref.load %arg1[%14] : memref<16xi32, #tpu.memory_space<smem>>
    %16 = arith.index_cast %15 : i32 to index
    %c0_4 = arith.constant 0 : index
    %17 = vector.load %arg2[%16, %c0_4] : memref<1000x256xf32, #tpu.memory_space<vmem>>, vector<1x256xf32>
    %c2 = arith.constant 2 : index
    %c0_5 = arith.constant 0 : index
    %18 = vector.load %arg3[%c2, %c0_5] : memref<8x256xf32, #tpu.memory_space<vmem>>, vector<1x256xf32>
    tpu.vector_store %arg3[%c2, %c0_5], %17 {strides = array<i32>} : memref<8x256xf32, #tpu.memory_space<vmem>>, vector<1x256xf32>,
    %c3_i32 = arith.constant 3 : i32
    %19 = arith.addi %0, %c3_i32 : i32
    %20 = arith.index_cast %19 : i32 to index
    %21 = memref.load %arg1[%20] : memref<16xi32, #tpu.memory_space<smem>>
    %22 = arith.index_cast %21 : i32 to index
    %c0_6 = arith.constant 0 : index
    %23 = vector.load %arg2[%22, %c0_6] : memref<1000x256xf32, #tpu.memory_space<vmem>>, vector<1x256xf32>
    %c3 = arith.constant 3 : index
    %c0_7 = arith.constant 0 : index
    %24 = vector.load %arg3[%c3, %c0_7] : memref<8x256xf32, #tpu.memory_space<vmem>>, vector<1x256xf32>
    tpu.vector_store %arg3[%c3, %c0_7], %23 {strides = array<i32>} : memref<8x256xf32, #tpu.memory_space<vmem>>, vector<1x256xf32>,
    %c4_i32 = arith.constant 4 : i32
    %25 = arith.addi %0, %c4_i32 : i32
    %26 = arith.index_cast %25 : i32 to index
    %27 = memref.load %arg1[%26] : memref<16xi32, #tpu.memory_space<smem>>
    %28 = arith.index_cast %27 : i32 to index
    %c0_8 = arith.constant 0 : index
    %29 = vector.load %arg2[%28, %c0_8] : memref<1000x256xf32, #tpu.memory_space<vmem>>, vector<1x256xf32>
    %c4 = arith.constant 4 : index
    %c0_9 = arith.constant 0 : index
    %30 = vector.load %arg3[%c4, %c0_9] : memref<8x256xf32, #tpu.memory_space<vmem>>, vector<1x256xf32>
    tpu.vector_store %arg3[%c4, %c0_9], %29 {strides = array<i32>} : memref<8x256xf32, #tpu.memory_space<vmem>>, vector<1x256xf32>,
    %c5_i32 = arith.constant 5 : i32
    %31 = arith.addi %0, %c5_i32 : i32
    %32 = arith.index_cast %31 : i32 to index
    %33 = memref.load %arg1[%32] : memref<16xi32, #tpu.memory_space<smem>>
    %34 = arith.index_cast %33 : i32 to index
    %c0_10 = arith.constant 0 : index
    %35 = vector.load %arg2[%34, %c0_10] : memref<1000x256xf32, #tpu.memory_space<vmem>>, vector<1x256xf32>
    %c5 = arith.constant 5 : index
    %c0_11 = arith.constant 0 : index
    %36 = vector.load %arg3[%c5, %c0_11] : memref<8x256xf32, #tpu.memory_space<vmem>>, vector<1x256xf32>
    tpu.vector_store %arg3[%c5, %c0_11], %35 {strides = array<i32>} : memref<8x256xf32, #tpu.memory_space<vmem>>, vector<1x256xf32>,
    %c6_i32 = arith.constant 6 : i32
    %37 = arith.addi %0, %c6_i32 : i32
    %38 = arith.index_cast %37 : i32 to index
    %39 = memref.load %arg1[%38] : memref<16xi32, #tpu.memory_space<smem>>
    %40 = arith.index_cast %39 : i32 to index
    %c0_12 = arith.constant 0 : index
    %41 = vector.load %arg2[%40, %c0_12] : memref<1000x256xf32, #tpu.memory_space<vmem>>, vector<1x256xf32>
    %c6 = arith.constant 6 : index
    %c0_13 = arith.constant 0 : index
    %42 = vector.load %arg3[%c6, %c0_13] : memref<8x256xf32, #tpu.memory_space<vmem>>, vector<1x256xf32>
    tpu.vector_store %arg3[%c6, %c0_13], %41 {strides = array<i32>} : memref<8x256xf32, #tpu.memory_space<vmem>>, vector<1x256xf32>,
    %c7_i32 = arith.constant 7 : i32
    %43 = arith.addi %0, %c7_i32 : i32
    %44 = arith.index_cast %43 : i32 to index
    %45 = memref.load %arg1[%44] : memref<16xi32, #tpu.memory_space<smem>>
    %46 = arith.index_cast %45 : i32 to index
    %c0_14 = arith.constant 0 : index
    %47 = vector.load %arg2[%46, %c0_14] : memref<1000x256xf32, #tpu.memory_space<vmem>>, vector<1x256xf32>
    %c7 = arith.constant 7 : index
    %c0_15 = arith.constant 0 : index
    %48 = vector.load %arg3[%c7, %c0_15] : memref<8x256xf32, #tpu.memory_space<vmem>>, vector<1x256xf32>
    tpu.vector_store %arg3[%c7, %c0_15], %47 {strides = array<i32>} : memref<8x256xf32, #tpu.memory_space<vmem>>, vector<1x256xf32>,
    return
  }
  func.func @transform_0(%arg0: i32, %arg1: memref<16xi32, #tpu.memory_space<smem>>) -> (i32, i32) {
    %c0_i32 = arith.constant 0 : i32
    %c0_i32_0 = arith.constant 0 : i32
    %c0_i32_1 = arith.constant 0 : i32
    return %c0_i32, %c0_i32_0 : i32, i32
  }
  func.func @transform_1(%arg0: i32, %arg1: memref<16xi32, #tpu.memory_space<smem>>) -> (i32, i32) {
    %c0_i32 = arith.constant 0 : i32
    %c0_i32_0 = arith.constant 0 : i32
    return %arg0, %c0_i32 : i32, i32
  }
}

</mosaic_0001>

<bundles_post_ra>
// kernel: tpu_custom_call.1
= control target key start
LH: loop header
LB: loop body
LE: loop exit
PB: predicated region body
PF: predicated region fallthrough
CT: control target
= control target key end

     0   :  { %s545_s12 = smov [#allocation3]   ;;  %s715_s0 = inlined_call_operand.hbm [shape: s32[16], index: 0, kind: input, shape index: {}]   ;;  %s716_s1 = inlined_call_operand.hbm [shape: f32[1000,256], index: 1, kind: input, shape index: {}]   ;;  %s717_s2 = inlined_call_operand.hbm [shape: f32[16,256], index: 2, kind: output, shape index: {}]  }
   0x1   :  { %s8_s11 = sshll.u32 %s715_s0, 4  ;;  %s9_s11 = int_to_ptr.hbm [resolvable:$true] %s8_s11 }
   0x2   :  { %11 = dma.hbm_to_smem %s9_s11, 16, %s545_s12, [#allocation2] }
   0x3   :  { %519 = dma.done.wait [#allocation2], 16 }
   0x4   :  { %520 = vsyncadd [#allocation2], 4294967280 }
   0x5   :  { %14 = sfence }
   0x6   :  { %15 = vsyncpa [#allocation5], 0 }
   0x7   :  { %16 = vsyncpa [#allocation6], 0 }
   0x8   :  { %18 = vsyncpa [#allocation6 + $0x1], 0  ;;  %s567_s13 = smov 0   ;;  %s569_s14 = smov 0  }
   0x9   :  { %s571_s15 = smov 0   ;;  %s573_s16 = smov 0  }
   0xa LB: > { %s588_s0 = sadd.s32 4294967295, %s543_s16   ;;  %s336_s17 = sadd.s32 4294967294, %s543_s16   ;;  %s543_s16 = sphi %s573_s16, %s725_s16   ;;  %s539_s15 = sphi %s571_s15, %s724_s15   ;;  %s535_s14 = sphi %s569_s14, %s723_s14   ;;  %s531_s13 = sphi %s567_s13, %s722_s13  }
   0xb   : > { %s592_s18 = sadd.s32 1, %s543_s16   ;;  %s52_s19 = sadd.s32 1, %s539_s15 }
   0xc   : > { %s49_s20 = ssub.s32 %s543_s16, %s592_s18  ;;  %p62_p0 = scmp.ne.s32.totalorder %s539_s15, %s535_s14 }
   0xd   : > { %p50_p1 = scmp.eq.s32.totalorder %s49_s20, 0  ;;  %p63_p2 = scmp.eq.s32.totalorder %s588_s0, 1 }
   0xe   : > { %p68_p3 = scmp.ne.s32.totalorder %s535_s14, %s531_s13  ;;  %p69_p4 = scmp.eq.s32.totalorder %s336_s17, 1 }
   0xf   : > { %s603_s21 = scalar_select %p50_p1, %s539_s15, %s52_s19  }
  0x10   : > { %p605_p5 = por %p63_p2, %p62_p0  ;;  %p609_p6 = por %p69_p4, %p68_p3 }
  0x11   : > { %p337_p7 = scmp.ge.s32.totalorder %s543_s16, 1  ;;  %p76_p8 = scmp.lt.s32.totalorder %s543_s16, 3 }
  0x12   : > { %p394_p9 = scmp.eq.s32.totalorder %s588_s0, 0  ;;  %s87_s26 = sshll.u32 %s716_s1, 4  ;;  %s88_s26 = int_to_ptr.hbm [resolvable:$true] %s87_s26 }
  0x13   : > { %p77_p10 = pnand %p337_p7, %p76_p8  ;;  %s546_s27 = smov [#allocation4]  }
  0x14   : > { %s89_s28 = sshll.u32 %s546_s27, 4  ;;  %s547_s29 = smov 256   ;;  %s90_s28 = int_to_ptr.vmem [resolvable:$true] %s89_s28 }
  0x15   : > { %p386_p11 = pneg %p77_p10  ;;  %s548_s30 = smov 16  }
  0x16   : > { %105 = sbr.rel (%p77_p10) target bundleno = 72 (0x48), region = 24 }
  0x17   : > { %p387_p12 = pnand %p394_p9, %p386_p11 }
  0x19   : > { %389 = dma.hbm_to_vmem [thread:$0]  (!%p387_p12), %s88_s26, 32000, %s90_s28, [#allocation5], %s547_s29, %s547_s29, %s548_s30  }
  0x1b   : > { %522 = dma.done.wait (%p394_p9), [#allocation5], 32000  }
  0x1c   : > { %524 = vsyncadd (%p394_p9), [#allocation5], 4294935296  ;;  %s118_s3 = sand.u32 1, %s535_s14   ;;  %s627_s4 = sshll.u32 %s588_s0, 3  ;;  %v132_v0 = vlaneseq }
  0x1d   : > { %s341_s5 = sshll.u32 %s118_s3, 4  ;;  %s122_s6 = sld [smem:[#allocation3 + %s627_s4]] }
  0x1e   : > { %s138_s7 = sadd.s32 1, %s627_s4  ;;  %s152_s8 = sadd.s32 2, %s627_s4  ;;  %vm641_vm0 = vcmp.lt.s32.totalorder %v132_v0, 256 }
  0x1f   : > { %s139_s9 = sld [smem:[#allocation3 + %s138_s7]]  ;;  %s166_s10 = sadd.s32 3, %s627_s4 }
  0x20   : > { %s153_s11 = sld [smem:[#allocation3 + %s152_s8]]  ;;  %s180_s12 = sadd.s32 4, %s627_s4 }
  0x21   : > { %s636_s17 = sld [smem:[#allocation3 + %s166_s10]]  ;;  %s194_s19 = sadd.s32 5, %s627_s4 }
  0x22   : > { %s639_s26 = sld [smem:[#allocation3 + %s180_s12]]  ;;  %s647_s10 = scalar_lea.vmem [#allocation7], %s341_s5 }
  0x23   : > { %s123_s20 = sshra.s32 %s122_s6, 3  ;;  %s126_s24 = sand.u32 7, %s122_s6 }
  0x24   : > { %s371_s25 = sshll.u32 %s123_s20, 4  ;;  %s645_s28 = sld [smem:[#allocation3 + %s194_s19]] }
  0x25   : > { %s129_s27 = sadd.s32 %s371_s25, %s126_s24  ;;  %s140_s29 = sshra.s32 %s139_s9, 3 }
  0x26   : > { %s130_s30 = scalar_lea.vmem [#allocation4], %s129_s27  ;;  %s143_s7 = sand.u32 7, %s139_s9 }
  0x27   : > { %v131_v2 = vld [vmem:[%s130_s30] ss:$8 sm:$0x3]  ;;  %s372_s8 = sshll.u32 %s140_s29, 4  ;;  %s154_s12 = sshra.s32 %s153_s11, 3 }
  0x28   : > { %136 = vst.msk [vmem:[%s647_s10] ss:$8 sm:$0x3] %vm641_vm0, %v131_v2  ;;  %s146_s6 = sadd.s32 %s372_s8, %s143_s7  ;;  %s157_s19 = sand.u32 7, %s153_s11 }
  0x29   : > { %s147_s20 = scalar_lea.vmem [#allocation4], %s146_s6  ;;  %s373_s24 = sshll.u32 %s154_s12, 4 }
  0x2a   : > { %v148_v3 = vld [vmem:[%s147_s20] ss:$8 sm:$0x3]  ;;  %s168_s9 = sshra.s32 %s636_s17, 3  ;;  %s160_s5 = sadd.s32 %s373_s24, %s157_s19 }
  0x2b   : > { %347 = vst.msk [vmem:[%s647_s10 + $0x1] ss:$8 sm:$0x3] %vm641_vm0, %v148_v3  ;;  %s171_s25 = sand.u32 7, %s636_s17  ;;  %s374_s27 = sshll.u32 %s168_s9, 4 }
  0x2c   : > { %s161_s29 = scalar_lea.vmem [#allocation4], %s160_s5  ;;  %s174_s30 = sadd.s32 %s374_s27, %s171_s25 }
  0x2d   : > { %v162_v4 = vld [vmem:[%s161_s29] ss:$8 sm:$0x3]  ;;  %s182_s7 = sshra.s32 %s639_s26, 3  ;;  %s185_s11 = sand.u32 7, %s639_s26 }
  0x2e   : > { %350 = vst.msk [vmem:[%s647_s10 + $0x2] ss:$8 sm:$0x3] %vm641_vm0, %v162_v4  ;;  %s175_s8 = scalar_lea.vmem [#allocation4], %s174_s30  ;;  %s375_s6 = sshll.u32 %s182_s7, 4 }
  0x2f   : > { %v176_v5 = vld [vmem:[%s175_s8] ss:$8 sm:$0x3]  ;;  %s196_s12 = sshra.s32 %s645_s28, 3  ;;  %s188_s17 = sadd.s32 %s375_s6, %s185_s11 }
  0x30   : > { %353 = vst.msk [vmem:[%s647_s10 + $0x3] ss:$8 sm:$0x3] %vm641_vm0, %v176_v5  ;;  %s199_s19 = sand.u32 7, %s645_s28  ;;  %s376_s20 = sshll.u32 %s196_s12, 4 }
  0x31   : > { %s189_s24 = scalar_lea.vmem [#allocation4], %s188_s17  ;;  %s202_s9 = sadd.s32 %s376_s20, %s199_s19 }
  0x32   : > { %v190_v6 = vld [vmem:[%s189_s24] ss:$8 sm:$0x3]  ;;  %s208_s5 = sadd.s32 6, %s627_s4  ;;  %s203_s25 = scalar_lea.vmem [#allocation4], %s202_s9 }
  0x33   : > { %356 = vst.msk [vmem:[%s647_s10 + $0x4] ss:$8 sm:$0x3] %vm641_vm0, %v190_v6  ;;  %s209_s26 = sld [smem:[#allocation3 + %s208_s5]]  ;;  %s222_s27 = sadd.s32 7, %s627_s4 }
  0x34   : > { %v204_v7 = vld [vmem:[%s203_s25] ss:$8 sm:$0x3]  ;;  %s379_s29 = sshll.u32 %s588_s0, 4  ;;  %s223_s30 = sld [smem:[#allocation3 + %s222_s27]] }
  0x35   : > { %359 = vst.msk [vmem:[%s647_s10 + $0x5] ss:$8 sm:$0x3] %vm641_vm0, %v204_v7  ;;  %s248_s11 = scalar_lea.hbm %s717_s2, %s379_s29  ;;  %s250_s8 = sshll.u32 %s647_s10, 4  ;;  %s251_s8 = int_to_ptr.vmem [resolvable:$true] %s250_s8 }
  0x36   : > { %s252_s19 = sshll.u32 %s248_s11, 4  ;;  %s495_s28 = scalar_lea.hbm %s717_s2, 32  ;;  %s253_s19 = int_to_ptr.hbm [resolvable:$true] %s252_s19 }
  0x37   : > { %s489_s27 = sshra.s32 %s253_s19, 4  ;;  %s490_s27 = int_to_ptr.hbm [resolvable:$true] %s489_s27 }
  0x38   : > { %s491_s29 = scalar_lea.hbm %s490_s27, 16  ;;  %p496_p2 = scmp.lt.s32.totalorder %s490_s27, %s717_s2 }
  0x39   : > { %s210_s6 = sshra.s32 %s209_s26, 3  ;;  %s213_s12 = sand.u32 7, %s209_s26 }
  0x3a   : > { %s377_s17 = sshll.u32 %s210_s6, 4  ;;  %s224_s24 = sshra.s32 %s223_s30, 3 }
  0x3b   : > { %s216_s20 = sadd.s32 %s377_s17, %s213_s12  ;;  %s227_s4 = sand.u32 7, %s223_s30 }
  0x3c   : > { %s217_s0 = scalar_lea.vmem [#allocation4], %s216_s20  ;;  %s378_s9 = sshll.u32 %s224_s24, 4 }
  0x3d   : > { %v218_v8 = vld [vmem:[%s217_s0] ss:$8 sm:$0x3]  ;;  %s230_s5 = sadd.s32 %s378_s9, %s227_s4  ;;  %s237_s26 = scalar_lea.sflag [#allocation6], %s118_s3 }
  0x3e   : > { %362 = vst.msk [vmem:[%s647_s10 + $0x6] ss:$8 sm:$0x3] %vm641_vm0, %v218_v8  ;;  %s231_s25 = scalar_lea.vmem [#allocation4], %s230_s5  ;;  %p492_p13 = scmp.ne.s32.totalorder %s490_s27, %s491_s29 }
  0x3f   : > { %v232_v9 = vld [vmem:[%s231_s25] ss:$8 sm:$0x3]  ;;  %p497_p3 = scmp.lt.s32.totalorder %s495_s28, %s491_s29 }
  0x40   : > { %365 = vst.msk [vmem:[%s647_s10 + $0x7] ss:$8 sm:$0x3] %vm641_vm0, %v232_v9  ;;  %p493_p0 = pnand %p492_p13, %p605_p5 }
  0x41   : > { %p498_p4 = por %p497_p3, %p496_p2 }
  0x42   : > { %p494_p1 = pneg %p493_p0 }
  0x44   : > { %p499_p7 = pnand %p498_p4, %p494_p1 }
  0x46   : > { %502 = shalt.err (!%p499_p7)
}
  0x47   : > { %384 = dma.vmem_to_hbm [thread:$0]  (%p605_p5), %s251_s8, 256, %s253_s19, %s237_s26  }
  0x48 PF: > { %p396_p8 = scmp.ge.s32.totalorder %s543_s16, 2  ;;  %s264_s3 = sand.u32 1, %s531_s13  }
  0x49   : > { %s265_s10 = scalar_lea.sflag [#allocation6], %s264_s3 }
  0x4a   : > { %p391_p9 = pnand %p396_p8, %p609_p6 }
  0x4c   : > { %p392_p10 = pneg %p391_p9 }
  0x4e   : > { %526 = dma.done.wait (%p392_p10), %s265_s10, 256  }
  0x4f   : > { %528 = vsyncadd (%p392_p10), %s265_s10, 4294967040  ;;  %p21_p11 = scmp.ge.s32.totalorder %s592_s18, 4   ;;  %s722_s13 = smov %s535_s14 }
  0x50   : > { %s723_s14 = smov %s539_s15  ;;  %s724_s15 = smov %s603_s21 }
  0x51   : > { %s725_s16 = smov %s592_s18  ;;  %23 = sbr.rel (!%p21_p11) target bundleno = 10 (0xa), region = 76 }
  0x56   :  { %271 = vsyncpa [#allocation5], 1 }
  0x57   :  { %273 = vsyncpa [#allocation5 + $0x1], 1 }
  0x58   :  { %274 = vsyncpa [#allocation6], 1 }
  0x59   :  { %276 = vsyncpa [#allocation6 + $0x1], 1 }

</bundles_post_ra>
